<compile_context>
chip_gen: v6e
topology: v6e:2x2x1
jax: 0.10.0
libtpu: 0.0.40
codegen_flags: <defaults>
</compile_context>

<pallas_src>
import functools

import jax
import jax.numpy as jnp
from jax.experimental import pallas as pl
from jax.experimental.pallas import tpu as pltpu


def _unet_en_kernel(x_ref, w_ref, mask_ref, alpha_ref, o_ref, patch_ref, *, H, W):
    """One batch element per grid step.

    x_ref:     (1, Cin, (H+2)*(W+2)+2)  zero-padded image, spatial dims
                                        flattened with row stride Wp = W+2
    w_ref:     (Cout, 9*Cin)            conv weights, rows = cout,
                                        cols = (kh*3+kw)*Cin + cin
    mask_ref:  (1, H*Wp)                1.0 on valid columns, 0.0 on the two
                                        row-overrun columns per output row
    alpha_ref: (1, 1) in SMEM           PReLU slope
    o_ref:     (1, Cout, H*Wp)          lane-dense output tile
    patch_ref: (9*Cin, H*Wp) VMEM       im2col patch scratch
    """
    Wp = W + 2
    hwp = H * Wp
    cin = x_ref.shape[1]

    # im2col via the padded-row-stride trick: each 3x3 tap (kh, kw) of the
    # flattened padded image is one contiguous length-(H*Wp) slice starting at
    # kh*Wp + kw.  Assemble the 9 taps into a single (9*Cin, H*Wp) patch.
    for kh in range(3):
        for kw in range(3):
            t = kh * 3 + kw
            off = kh * Wp + kw
            patch_ref[t * cin:(t + 1) * cin, :] = x_ref[0, :, off:off + hwp]

    # Single MXU matmul, K = 9*Cin, lane-dense (Cout, H*Wp) result.
    # Conv bias omitted: exactly cancelled by the non-affine InstanceNorm.
    acc = jnp.dot(w_ref[...], patch_ref[...],
                  preferred_element_type=jnp.float32)          # (Cout, H*Wp)

    # Zero the 2 row-overrun columns so they do not pollute the statistics.
    acc = acc * mask_ref[...]

    # InstanceNorm (no affine, eps=1e-5, biased variance): per-channel stats
    # over the H*W valid pixels, single pass (sum and sum-of-squares).
    inv_n = 1.0 / (H * W)
    mean = jnp.sum(acc, axis=1, keepdims=True) * inv_n         # (Cout, 1)
    ex2 = jnp.sum(acc * acc, axis=1, keepdims=True) * inv_n
    var = ex2 - mean * mean
    y = (acc - mean) * jax.lax.rsqrt(var + 1e-5)

    # PReLU with a single shared slope.
    a = alpha_ref[0, 0]
    y = jnp.where(y >= 0.0, y, a * y)

    o_ref[0] = y.astype(o_ref.dtype)


def unet_en_forward(enc, w_hwio, bias, prelu_alpha):
    """enc: NCHW. Returns NCHW output matching the PyTorch module."""
    del bias  # per-channel bias is exactly cancelled by the non-affine IN
    N, Cin, H, W = enc.shape
    Cout = w_hwio.shape[-1]
    Hp, Wp = H + 2, W + 2
    hwp = H * Wp
    L = Hp * Wp + 2  # +2 trailing zeros so the last tap's slice stays in bounds

    # Only HBM-side prep: zero-pad the halo and flatten H,W (row stride Wp).
    x_flat = jnp.pad(enc, ((0, 0), (0, 0), (1, 1), (1, 1))).reshape(N, Cin, Hp * Wp)
    x_flat = jnp.pad(x_flat, ((0, 0), (0, 0), (0, 2)))          # (N, Cin, L)

    # Conv weights -> (Cout, 9*Cin), matching the patch row order.
    w2 = jnp.transpose(w_hwio.reshape(9 * Cin, Cout))           # (Cout, 9*Cin)
    # Valid-column mask for the stride trick (constant, folded by XLA).
    mask = jnp.tile((jnp.arange(Wp) < W).astype(jnp.float32), H).reshape(1, hwp)
    alpha2 = jnp.asarray(prelu_alpha, jnp.float32).reshape(1, 1)

    kernel = functools.partial(_unet_en_kernel, H=H, W=W)

    out_flat = pl.pallas_call(
        kernel,
        out_shape=jax.ShapeDtypeStruct((N, Cout, hwp), jnp.float32),
        grid_spec=pltpu.PrefetchScalarGridSpec(
            num_scalar_prefetch=0,
            grid=(N,),
            in_specs=[
                pl.BlockSpec((1, Cin, L), lambda n: (n, 0, 0)),
                pl.BlockSpec((Cout, 9 * Cin), lambda n: (0, 0)),
                pl.BlockSpec((1, hwp), lambda n: (0, 0)),
                pl.BlockSpec(memory_space=pltpu.MemorySpace.SMEM),
            ],
            out_specs=pl.BlockSpec((1, Cout, hwp), lambda n: (n, 0, 0)),
            scratch_shapes=[pltpu.VMEM((9 * Cin, hwp), jnp.float32)],
        ),
        compiler_params=pltpu.CompilerParams(
            dimension_semantics=("parallel",)),
    )(x_flat, w2, mask, alpha2)

    # Drop the 2 overrun columns per row; reshape back to NCHW (contiguous).
    return out_flat.reshape(N, Cout, H, Wp)[:, :, :, :W]


def reference_forward(enc, w_hwio, bias, prelu_alpha):
    """Pure-JAX reference for correctness checking."""
    w_oihw = jnp.transpose(w_hwio, (3, 2, 0, 1))                # HWIO -> OIHW
    y = jax.lax.conv_general_dilated(
        enc, w_oihw, window_strides=(1, 1), padding="SAME",
        dimension_numbers=("NCHW", "OIHW", "NCHW"))
    y = y + bias.reshape(1, -1, 1, 1)
    mean = jnp.mean(y, axis=(2, 3), keepdims=True)
    var = jnp.mean((y - mean) ** 2, axis=(2, 3), keepdims=True)
    y = (y - mean) / jnp.sqrt(var + 1e-5)
    return jnp.where(y >= 0, y, prelu_alpha * y)


if __name__ == "__main__":
    # Module config: spatial_dims=2, in_channels_layer=4, out_channels_layer=8,
    # kernel_size=3, strides=1, num_res_units=0 (default -> Convolution path).
    N, Cin, Cout, H, W = 2, 4, 8, 16, 16

    key = jax.random.PRNGKey(0)
    k1, k2, k3 = jax.random.split(key, 3)
    enc = jax.random.normal(k1, (N, Cin, H, W), jnp.float32)

    # Deterministic parameter init (synthetic; shapes follow nn.Conv2d(Cin, Cout, 3)).
    w_hwio = 0.1 * jax.random.normal(k2, (3, 3, Cin, Cout), jnp.float32)
    bias = 0.1 * jax.random.normal(k3, (Cout,), jnp.float32)
    prelu_alpha = 0.25  # nn.PReLU() default init

    out = unet_en_forward(enc, w_hwio, bias, prelu_alpha)
    out = jax.block_until_ready(out)

    ref = reference_forward(enc, w_hwio, bias, prelu_alpha)
    assert out.shape == (N, Cout, H, W)
    assert jnp.allclose(out, ref, atol=2e-3, rtol=2e-3), (
        float(jnp.max(jnp.abs(out - ref))))

    print("KERNEL_OK")
</pallas_src>

<mosaic_0001>
module attributes {stable_mosaic.version = 11 : i64} {
  func.func @_unet_en_kernel(%arg0: i32, %arg1: memref<1x4x326xf32, #tpu.memory_space<vmem>>, %arg2: memref<8x36xf32, #tpu.memory_space<vmem>>, %arg3: memref<1x288xf32, #tpu.memory_space<vmem>>, %arg4: memref<1x1xf32, #tpu.memory_space<smem>>, %arg5: memref<1x8x288xf32, #tpu.memory_space<vmem>>, %arg6: memref<36x288xf32, #tpu.memory_space<vmem>>) attributes {dimension_semantics = [#tpu.dimension_semantics<parallel>], iteration_bounds = array<i64: 2>, scalar_prefetch = 0 : i64, scratch_operands = 1 : i64, tpu.core_type = #tpu.core_type<tc>, window_params = [{transform_indices = @transform_0, window_bounds = array<i64: 1, 4, 326>}, {pipeline_mode = #tpu.pipeline_mode<synchronous>, transform_indices = @transform_1, window_bounds = array<i64: 8, 36>}, {pipeline_mode = #tpu.pipeline_mode<synchronous>, transform_indices = @transform_2, window_bounds = array<i64: 1, 288>}, {transform_indices = @transform_3, window_bounds = array<i64: 1, 1>}, {transform_indices = @transform_4, window_bounds = array<i64: 1, 8, 288>}]} {
    %c0 = arith.constant 0 : index
    %c0_0 = arith.constant 0 : index
    %c0_1 = arith.constant 0 : index
    %0 = vector.load %arg1[%c0, %c0_0, %c0_1] : memref<1x4x326xf32, #tpu.memory_space<vmem>>, vector<1x4x288xf32>
    %1 = vector.shape_cast %0 : vector<1x4x288xf32> to vector<4x288xf32>
    %c0_2 = arith.constant 0 : index
    %c0_3 = arith.constant 0 : index
    %2 = vector.load %arg6[%c0_2, %c0_3] : memref<36x288xf32, #tpu.memory_space<vmem>>, vector<4x288xf32>
    tpu.vector_store %arg6[%c0_2, %c0_3], %1 {strides = array<i32>} : memref<36x288xf32, #tpu.memory_space<vmem>>, vector<4x288xf32>,
    %c0_4 = arith.constant 0 : index
    %c0_5 = arith.constant 0 : index
    %c1 = arith.constant 1 : index
    %3 = vector.load %arg1[%c0_4, %c0_5, %c1] : memref<1x4x326xf32, #tpu.memory_space<vmem>>, vector<1x4x288xf32>
    %4 = vector.shape_cast %3 : vector<1x4x288xf32> to vector<4x288xf32>
    %c4 = arith.constant 4 : index
    %c0_6 = arith.constant 0 : index
    %5 = vector.load %arg6[%c4, %c0_6] : memref<36x288xf32, #tpu.memory_space<vmem>>, vector<4x288xf32>
    tpu.vector_store %arg6[%c4, %c0_6], %4 {strides = array<i32>} : memref<36x288xf32, #tpu.memory_space<vmem>>, vector<4x288xf32>,
    %c0_7 = arith.constant 0 : index
    %c0_8 = arith.constant 0 : index
    %c2 = arith.constant 2 : index
    %6 = vector.load %arg1[%c0_7, %c0_8, %c2] : memref<1x4x326xf32, #tpu.memory_space<vmem>>, vector<1x4x288xf32>
    %7 = vector.shape_cast %6 : vector<1x4x288xf32> to vector<4x288xf32>
    %c8 = arith.constant 8 : index
    %c0_9 = arith.constant 0 : index
    %8 = vector.load %arg6[%c8, %c0_9] : memref<36x288xf32, #tpu.memory_space<vmem>>, vector<4x288xf32>
    tpu.vector_store %arg6[%c8, %c0_9], %7 {strides = array<i32>} : memref<36x288xf32, #tpu.memory_space<vmem>>, vector<4x288xf32>,
    %c0_10 = arith.constant 0 : index
    %c0_11 = arith.constant 0 : index
    %c18 = arith.constant 18 : index
    %9 = vector.load %arg1[%c0_10, %c0_11, %c18] : memref<1x4x326xf32, #tpu.memory_space<vmem>>, vector<1x4x288xf32>
    %10 = vector.shape_cast %9 : vector<1x4x288xf32> to vector<4x288xf32>
    %c12 = arith.constant 12 : index
    %c0_12 = arith.constant 0 : index
    %11 = vector.load %arg6[%c12, %c0_12] : memref<36x288xf32, #tpu.memory_space<vmem>>, vector<4x288xf32>
    tpu.vector_store %arg6[%c12, %c0_12], %10 {strides = array<i32>} : memref<36x288xf32, #tpu.memory_space<vmem>>, vector<4x288xf32>,
    %c0_13 = arith.constant 0 : index
    %c0_14 = arith.constant 0 : index
    %c19 = arith.constant 19 : index
    %12 = vector.load %arg1[%c0_13, %c0_14, %c19] : memref<1x4x326xf32, #tpu.memory_space<vmem>>, vector<1x4x288xf32>
    %13 = vector.shape_cast %12 : vector<1x4x288xf32> to vector<4x288xf32>
    %c16 = arith.constant 16 : index
    %c0_15 = arith.constant 0 : index
    %14 = vector.load %arg6[%c16, %c0_15] : memref<36x288xf32, #tpu.memory_space<vmem>>, vector<4x288xf32>
    tpu.vector_store %arg6[%c16, %c0_15], %13 {strides = array<i32>} : memref<36x288xf32, #tpu.memory_space<vmem>>, vector<4x288xf32>,
    %c0_16 = arith.constant 0 : index
    %c0_17 = arith.constant 0 : index
    %c20 = arith.constant 20 : index
    %15 = vector.load %arg1[%c0_16, %c0_17, %c20] : memref<1x4x326xf32, #tpu.memory_space<vmem>>, vector<1x4x288xf32>
    %16 = vector.shape_cast %15 : vector<1x4x288xf32> to vector<4x288xf32>
    %c20_18 = arith.constant 20 : index
    %c0_19 = arith.constant 0 : index
    %17 = vector.load %arg6[%c20_18, %c0_19] : memref<36x288xf32, #tpu.memory_space<vmem>>, vector<4x288xf32>
    tpu.vector_store %arg6[%c20_18, %c0_19], %16 {strides = array<i32>} : memref<36x288xf32, #tpu.memory_space<vmem>>, vector<4x288xf32>,
    %c0_20 = arith.constant 0 : index
    %c0_21 = arith.constant 0 : index
    %c36 = arith.constant 36 : index
    %18 = vector.load %arg1[%c0_20, %c0_21, %c36] : memref<1x4x326xf32, #tpu.memory_space<vmem>>, vector<1x4x288xf32>
    %19 = vector.shape_cast %18 : vector<1x4x288xf32> to vector<4x288xf32>
    %c24 = arith.constant 24 : index
    %c0_22 = arith.constant 0 : index
    %20 = vector.load %arg6[%c24, %c0_22] : memref<36x288xf32, #tpu.memory_space<vmem>>, vector<4x288xf32>
    tpu.vector_store %arg6[%c24, %c0_22], %19 {strides = array<i32>} : memref<36x288xf32, #tpu.memory_space<vmem>>, vector<4x288xf32>,
    %c0_23 = arith.constant 0 : index
    %c0_24 = arith.constant 0 : index
    %c37 = arith.constant 37 : index
    %21 = vector.load %arg1[%c0_23, %c0_24, %c37] : memref<1x4x326xf32, #tpu.memory_space<vmem>>, vector<1x4x288xf32>
    %22 = vector.shape_cast %21 : vector<1x4x288xf32> to vector<4x288xf32>
    %c28 = arith.constant 28 : index
    %c0_25 = arith.constant 0 : index
    %23 = vector.load %arg6[%c28, %c0_25] : memref<36x288xf32, #tpu.memory_space<vmem>>, vector<4x288xf32>
    tpu.vector_store %arg6[%c28, %c0_25], %22 {strides = array<i32>} : memref<36x288xf32, #tpu.memory_space<vmem>>, vector<4x288xf32>,
    %c0_26 = arith.constant 0 : index
    %c0_27 = arith.constant 0 : index
    %c38 = arith.constant 38 : index
    %24 = vector.load %arg1[%c0_26, %c0_27, %c38] : memref<1x4x326xf32, #tpu.memory_space<vmem>>, vector<1x4x288xf32>
    %25 = vector.shape_cast %24 : vector<1x4x288xf32> to vector<4x288xf32>
    %c32 = arith.constant 32 : index
    %c0_28 = arith.constant 0 : index
    %26 = vector.load %arg6[%c32, %c0_28] : memref<36x288xf32, #tpu.memory_space<vmem>>, vector<4x288xf32>
    tpu.vector_store %arg6[%c32, %c0_28], %25 {strides = array<i32>} : memref<36x288xf32, #tpu.memory_space<vmem>>, vector<4x288xf32>,
    %c0_29 = arith.constant 0 : index
    %c0_30 = arith.constant 0 : index
    %27 = vector.load %arg2[%c0_29, %c0_30] : memref<8x36xf32, #tpu.memory_space<vmem>>, vector<8x36xf32>
    %c0_31 = arith.constant 0 : index
    %c0_32 = arith.constant 0 : index
    %28 = vector.load %arg6[%c0_31, %c0_32] : memref<36x288xf32, #tpu.memory_space<vmem>>, vector<36x288xf32>
    %cst = arith.constant dense<0.000000e+00> : vector<8x288xf32>
    %29 = tpu.matmul %27, %28, %cst {dimension_numbers = #tpu.dot_dimension_numbers<[1], [0], [0], [1], [0, 0, 1, 1], [], []>} : vector<8x36xf32>, vector<36x288xf32>, vector<8x288xf32> -> vector<8x288xf32>
    %c0_33 = arith.constant 0 : index
    %c0_34 = arith.constant 0 : index
    %30 = vector.load %arg3[%c0_33, %c0_34] : memref<1x288xf32, #tpu.memory_space<vmem>>, vector<1x288xf32>
    %31 = vector.broadcast %30 : vector<1x288xf32> to vector<8x288xf32>
    %32 = arith.mulf %29, %31 : vector<8x288xf32>
    %cst_35 = arith.constant dense<0.000000e+00> : vector<8xf32>
    %33 = vector.multi_reduction <add>, %32, %cst_35 [1] : vector<8x288xf32> to vector<8xf32>
    %34 = vector.shape_cast %33 : vector<8xf32> to vector<8x1xf32>
    %cst_36 = arith.constant 3.906250e-03 : f32
    %35 = vector.broadcast %cst_36 : f32 to vector<8x1xf32>
    %36 = arith.mulf %34, %35 : vector<8x1xf32>
    %37 = arith.mulf %32, %32 : vector<8x288xf32>
    %cst_37 = arith.constant dense<0.000000e+00> : vector<8xf32>
    %38 = vector.multi_reduction <add>, %37, %cst_37 [1] : vector<8x288xf32> to vector<8xf32>
    %39 = vector.shape_cast %38 : vector<8xf32> to vector<8x1xf32>
    %cst_38 = arith.constant 3.906250e-03 : f32
    %40 = vector.broadcast %cst_38 : f32 to vector<8x1xf32>
    %41 = arith.mulf %39, %40 : vector<8x1xf32>
    %42 = arith.mulf %36, %36 : vector<8x1xf32>
    %43 = arith.subf %41, %42 : vector<8x1xf32>
    %44 = vector.broadcast %36 : vector<8x1xf32> to vector<8x288xf32>
    %45 = arith.subf %32, %44 : vector<8x288xf32>
    %cst_39 = arith.constant 9.99999974E-6 : f32
    %46 = vector.broadcast %cst_39 : f32 to vector<8x1xf32>
    %47 = arith.addf %43, %46 : vector<8x1xf32>
    %48 = math.rsqrt %47 : vector<8x1xf32>
    %49 = vector.broadcast %48 : vector<8x1xf32> to vector<8x288xf32>
    %50 = arith.mulf %45, %49 : vector<8x288xf32>
    %c0_40 = arith.constant 0 : index
    %c0_41 = arith.constant 0 : index
    %51 = memref.load %arg4[%c0_40, %c0_41] : memref<1x1xf32, #tpu.memory_space<smem>>
    %cst_42 = arith.constant 0.000000e+00 : f32
    %52 = vector.broadcast %cst_42 : f32 to vector<8x288xf32>
    %53 = arith.cmpf oge, %50, %52 : vector<8x288xf32>
    %54 = vector.broadcast %51 : f32 to vector<8x288xf32>
    %55 = arith.mulf %54, %50 : vector<8x288xf32>
    %56 = arith.select %53, %50, %55 : vector<8x288xi1>, vector<8x288xf32>
    %c0_43 = arith.constant 0 : index
    %c0_44 = arith.constant 0 : index
    %c0_45 = arith.constant 0 : index
    %57 = vector.load %arg5[%c0_43, %c0_44, %c0_45] : memref<1x8x288xf32, #tpu.memory_space<vmem>>, vector<1x8x288xf32>
    %58 = vector.shape_cast %57 : vector<1x8x288xf32> to vector<8x288xf32>
    %59 = vector.shape_cast %56 : vector<8x288xf32> to vector<1x8x288xf32>
    tpu.vector_store %arg5[%c0_43, %c0_44, %c0_45], %59 {strides = array<i32>} : memref<1x8x288xf32, #tpu.memory_space<vmem>>, vector<1x8x288xf32>,
    return
  }
  func.func @transform_0(%arg0: i32) -> (i32, i32, i32) {
    %c0_i32 = arith.constant 0 : i32
    %c0_i32_0 = arith.constant 0 : i32
    %c0_i32_1 = arith.constant 0 : i32
    return %arg0, %c0_i32, %c0_i32_0 : i32, i32, i32
  }
  func.func @transform_1(%arg0: i32) -> (i32, i32) {
    %c0_i32 = arith.constant 0 : i32
    %c0_i32_0 = arith.constant 0 : i32
    %c0_i32_1 = arith.constant 0 : i32
    return %c0_i32, %c0_i32_0 : i32, i32
  }
  func.func @transform_2(%arg0: i32) -> (i32, i32) {
    %c0_i32 = arith.constant 0 : i32
    %c0_i32_0 = arith.constant 0 : i32
    %c0_i32_1 = arith.constant 0 : i32
    return %c0_i32, %c0_i32_0 : i32, i32
  }
  func.func @transform_3(%arg0: i32) -> (i32, i32) {
    %c0_i32 = arith.constant 0 : i32
    %c0_i32_0 = arith.constant 0 : i32
    %c0_i32_1 = arith.constant 0 : i32
    return %c0_i32, %c0_i32_0 : i32, i32
  }
  func.func @transform_4(%arg0: i32) -> (i32, i32, i32) {
    %c0_i32 = arith.constant 0 : i32
    %c0_i32_0 = arith.constant 0 : i32
    %c0_i32_1 = arith.constant 0 : i32
    return %arg0, %c0_i32, %c0_i32_0 : i32, i32, i32
  }
}

</mosaic_0001>

<bundles_post_ra>
// kernel: tpu_custom_call.1
= control target key start
LH: loop header
LB: loop body
LE: loop exit
PB: predicated region body
PF: predicated region fallthrough
CT: control target
= control target key end

     0   :  { %s1229_s0 = inlined_call_operand.hbm [shape: f32[2,4,326], index: 0, kind: input, shape index: {}]   ;;  %s1230_s1 = inlined_call_operand.hbm [shape: f32[8,36], index: 1, kind: input, shape index: {}]   ;;  %s1231_s2 = inlined_call_operand.vmem [shape: f32[1,288], index: 2, kind: input, shape index: {}]   ;;  %s1232_s3 = inlined_call_operand.<no memory space> [shape: f32[1,1], index: 3, kind: input, shape index: {}]   ;;  %s1233_s4 = inlined_call_operand.hbm [shape: f32[2,8,288], index: 4, kind: output, shape index: {}]  }
   0x1   :  { %9 = sst [smem:[#allocation3]] %s1232_s3 }
   0x2   :  { %10 = vsyncpa [#allocation5], 0 }
   0x3   :  { %12 = vsyncpa [#allocation5 + $0x1], 0 }
   0x4   :  { %13 = vsyncpa [#allocation8], 0 }
   0x5   :  { %14 = vsyncpa [#allocation6], 0 }
   0x6   :  { %16 = vsyncpa [#allocation6 + $0x1], 0  ;;  %s1007_s17 = smov 0   ;;  %s1009_s18 = smov 0  }
   0x7   :  { %s1011_s19 = smov 0   ;;  %s1013_s20 = smov 0  }
   0x8 LB: > { %s1028_s3 = sadd.s32 4294967295, %s964_s20   ;;  %s728_s21 = sadd.s32 4294967294, %s964_s20   ;;  %s964_s20 = sphi %s1013_s20, %s1256_s20   ;;  %s960_s19 = sphi %s1011_s19, %s1255_s19   ;;  %s956_s18 = sphi %s1009_s18, %s1254_s18   ;;  %s952_s17 = sphi %s1007_s17, %s1253_s17  }
   0x9   : > { %p42_p0 = scmp.ne.s32.totalorder %s956_s18, %s952_s17  ;;  %p1234_p1 = scmp.eq.s32.totalorder %s1028_s3, 0 }
   0xa   : > { %p135_p3 = scmp.eq.s32.totalorder %s728_s21, 1  ;;  %p729_p5 = scmp.ge.s32.totalorder %s964_s20, 1 }
   0xb   : > { %p1037_p4 = por %p1234_p1, %p42_p0  ;;  %p142_p7 = scmp.lt.s32.totalorder %s964_s20, 3 }
   0xc   : > { %p1042_p6 = por %p135_p3, %p42_p0  ;;  %s966_s25 = smov [#allocation7]  }
   0xd   : > { %s1238_s22 = scalar_select %p1037_p4, 1, 0 }
   0xe   : > { %s1239_s23 = scalar_select %p1042_p6, 1, 0 }
   0xf   : > { %p1047_p8 = pnand %p729_p5, %p142_p7  ;;  %s155_s26 = sshll.u32 %s966_s25, 4  ;;  %s156_s26 = int_to_ptr.vmem [resolvable:$true] %s155_s26 }
  0x10   : > { %s1055_s27 = sadd.s32 1, %s964_s20   ;;  %s29_s5 = sadd.s32 1, %s960_s19 }
  0x11   : > { %s1240_s24 = scalar_select %p1047_p8, 1, 0 }
  0x12   : > { %p775_p10 = pneg %p1047_p8  ;;  %s26_s29 = ssub.s32 %s964_s20, %s1055_s27 }
  0x13   : > { %p1065_p12 = scmp.eq.s32.totalorder %s26_s29, 0  ;;  %p36_p13 = scmp.ne.s32.totalorder %s960_s19, %s956_s18 }
  0x14   : > { %p1059_p11 = pnand %p775_p10, %p1234_p1  ;;  %s853_s6 = scalar_lea.vmem %s156_s26, 128 }
  0x15   : > { %p854_p3 = scmp.ne.s32.totalorder %s156_s26, %s853_s6  ;;  %p861_p9 = scmp.lt.s32.totalorder %s156_s26, %s156_s26 }
  0x16   : > { %p844_p0 = pneg %p1059_p11  ;;  %p862_p2 = scmp.lt.s32.totalorder %s853_s6, %s853_s6 }
  0x18   : > { %p856_p5 = pnand %p854_p3, %p844_p0  ;;  %p863_p10 = por %p862_p2, %p861_p9 }
  0x1a   : > { %p857_p7 = pneg %p856_p5 }
  0x1c   : > { %p864_p1 = pnand %p863_p10, %p857_p7 }
  0x1e   : > { %867 = shalt.err (!%p864_p1)
}
  0x1f   : > { %778 = dma.hbm_to_vmem [thread:$0]  (!%p1059_p11), %s1230_s1, 128, %s156_s26, [#allocation8]  }
  0x20   : > { %s1082_s9 = scalar_select %p1065_p12, %s960_s19, %s29_s5  }
  0x21   : > { %p37_p1 = scmp.eq.s32.totalorder %s964_s20, 0  ;;  %p1243_p2 = scmp.eq.s32.totalorder %s1028_s3, 1 }
  0x22   : > { %p788_p0 = scmp.lt.s32.totalorder %s964_s20, 2  ;;  %s172_s11 = sand.u32 1, %s960_s19  }
  0x23   : > { %p1090_p9 = por %p1243_p2, %p36_p13  ;;  %p38_p3 = por %p37_p1, %p36_p13 }
  0x24   : > { %s762_s12 = smul.u32 12, %s172_s11  ;;  %s173_s28 = scalar_lea.sflag [#allocation5], %s172_s11 }
  0x25   : > { %s1244_s10 = scalar_select %p1090_p9, 1, 0 }
  0x26   : > { %s763_s13 = smul.u32 192, %s964_s20  ;;  %p1100_p5 = pnand %p788_p0, %p38_p3 }
  0x27   : > { %s176_s25 = scalar_lea.vmem [#allocation4], %s762_s12  ;;  %s873_s6 = scalar_lea.hbm %s1229_s0, 384 }
  0x28   : > { %s1107_s21 = scalar_lea.hbm %s1229_s0, %s763_s13  ;;  %s184_s26 = sshll.u32 %s176_s25, 4  ;;  %s185_s26 = int_to_ptr.vmem [resolvable:$true] %s184_s26 }
  0x29   : > { %s868_s29 = scalar_lea.hbm %s1107_s21, 192  ;;  %p870_p12 = pneg %p1100_p5 }
  0x2a   : > { %p869_p11 = scmp.ne.s32.totalorder %s1107_s21, %s868_s29  ;;  %p874_p10 = scmp.lt.s32.totalorder %s1107_s21, %s1229_s0 }
  0x2b   : > { %p875_p1 = scmp.lt.s32.totalorder %s873_s6, %s868_s29 }
  0x2c   : > { %p871_p13 = pnand %p870_p12, %p869_p11 }
  0x2d   : > { %p876_p2 = por %p875_p1, %p874_p10 }
  0x2e   : > { %p872_p7 = pneg %p871_p13 }
  0x30   : > { %p877_p0 = pnand %p876_p2, %p872_p7 }
  0x32   : > { %880 = shalt.err (!%p877_p0)
}
  0x33   : > { %s881_s12 = scalar_lea.vmem %s185_s26, 192  ;;  %s967_s11 = smov [#allocation4]  }
  0x34   : > { %p882_p3 = scmp.ne.s32.totalorder %s185_s26, %s881_s12  ;;  %s886_s13 = sshll.u32 %s967_s11, 4  ;;  %s887_s13 = int_to_ptr.vmem [resolvable:$false] %s886_s13 }
  0x35   : > { %s888_s15 = scalar_lea.vmem %s887_s13, 384  ;;  %p889_p11 = scmp.lt.s32.totalorder %s185_s26, %s887_s13 }
  0x36   : > { %p884_p6 = pnand %p882_p3, %p870_p12  ;;  %p890_p13 = scmp.lt.s32.totalorder %s888_s15, %s881_s12 }
  0x38   : > { %p885_p9 = pneg %p884_p6  ;;  %p891_p4 = por %p890_p13, %p889_p11 }
  0x3a   : > { %p892_p8 = pnand %p891_p4, %p885_p9 }
  0x3c   : > { %895 = shalt.err (!%p892_p8)
}
  0x3d   : > { %782 = dma.hbm_to_vmem [thread:$0]  (!%p1100_p5), %s1107_s21, 192, %s185_s26, %s173_s28  }
  0x3e   : > { %p1246_p7 = scmp.ne.s32.totalorder %s1240_s24, 0 }
  0x3f   : > { %s1126_s16 = sand.u32 (!%p1246_p7), 1, %s956_s18   ;;  %p1247_p6 = scmp.ne.s32.totalorder (!%p1246_p7), %s1238_s22, 0 }
  0x40   : > { %193 = sbr.rel (%p1246_p7) target bundleno = 625 (0x271), region = 36  ;;  %s196_s29 = scalar_lea.sflag (!%p1246_p7), [#allocation5], %s1126_s16 }
  0x41   : > { %s764_s25 = smul.u32 (!%p1246_p7), 12, %s1126_s16 }
  0x43   : > { %s1130_s30 = scalar_lea.vmem (!%p1246_p7), [#allocation4], %s764_s25 }
  0x45   : > { %939 = dma.done.wait (%p1247_p6), %s196_s29, 192  }
  0x46   : > { %941 = vsyncadd (%p1247_p6), %s196_s29, 4294967104  ;;  %p1248_p4 = scmp.eq.s32.totalorder %s1028_s3, 0 }
  0x48   : > { %943 = dma.done.wait (%p1248_p4), [#allocation8], 128   ;;  %p1249_p8 = pmov %p1248_p4 }
  0x49   : > { %v968_v0 = vmov 0.0   ;;  %v383_v1 = vld [vmem:[%s1130_s30 + $0x8] sm:$0xf]  ;;  %v382_v2 = vld [vmem:[%s1130_s30] sm:$0xff]  ;;  %s969_s24 = smov 90   ;;  %vm235_vm0 = vcmask 257024  }
  0x4a   : > { %945 = vsyncadd (%p1249_p8), [#allocation8], 4294967168  ;;  %749 = vmatprep.subr.mxu1 %v968_v0  ;;  %496 = vmatprep.mubr.f32.mxu0 %v968_v0  ;;  %v386_v3 = vcombine.high %v382_v2, %v382_v2  ;;  %233 = vst [vmem:[#allocation2] sm:$0xf] %v382_v2  ;;  %v342_v4 = vld [vmem:[%s1130_s30 + $0x8] sm:$0xf]  ;;  %v365_v7 = vcombine.low %v382_v2, %v382_v2 }
  0x4b   : > { %391 = vrot.lane.b32.xlu0 %v383_v1, %s969_s24  ;;  %387 = vrot.lane.b32.xlu1 %v382_v2, %s969_s24  ;;  %v229_v5 = vld [vmem:[%s1130_s30 + $0x8] sm:$0xf]  ;;  %s970_s22 = smov 91   ;;  %s971_s14 = smov 92   ;;  %vm977_vm1 = vmmov 0   ;;  %vm393_vm2 = vcmask 736256  }
  0x4c   : > { %234 = vst [vmem:[#allocation2 + $0x8] sm:$0xf] %v386_v3  ;;  %236 = vst.msk [vmem:[#allocation2 + $0x10] sm:$0xf] %vm235_vm0, %v229_v5  ;;  %v836_v6 = vld [vmem:[%s1130_s30 + $0x8] ss:$0 sps:$4 sm:$0xff]   ;;  %759 = vmatprep.mubr.msk.f32.mxu1 %vm977_vm1, %v968_v0 }
  0x4d   : > { %s972_s21 = smov 109   ;;  %v301_v8 = vld [vmem:[%s1130_s30 + $0x8] sm:$0xf]  ;;  %s973_s26 = smov 108   ;;  %vm352_vm3 = vcmask 752640   ;;  %vm422_vm4 = vcmask 1043456  }
  0x4e   : > { %v837_v9 = vld [vmem:[%s1130_s30 + $0x8] ss:$0 sps:$4 sm:$0xff]   ;;  %s974_s28 = smov 126   ;;  %s975_s5 = smov 110   ;;  %vm257_vm5 = vcmask 261124   ;;  %vm373_vm6 = vcmask 744448  }
  0x4f   : > { %369 = vrot.lane.b32.xlu1 %v382_v2, %s970_s22  ;;  %350 = vrot.lane.b32.xlu0 %v342_v4, %s971_s14  ;;  %v260_v10 = vld [vmem:[%s1130_s30 + $0x8] sm:$0xf]  ;;  %s976_s6 = smov 127   ;;  %vm311_vm7 = vcmask 891904   ;;  %vm332_vm8 = vcmask 883712   ;;  %vm270_vm9 = vcmask 1031168  }
  0x50   : > { %v838_v11 = vld [vmem:[%s1130_s30 + $0x8] ss:$0 sps:$4 sm:$0xff]   ;;  %vm291_vm10 = vcmask 900096   ;;  %vm249_vm11 = vcmask 1039360   ;;  %vm418_vm12 = vcmask 293888   ;;  %vm594_vm13 = vcmask 261120  }
  0x51   : > { %v839_v12 = vld [vmem:[%s1130_s30 + $0x8] ss:$0 sps:$4 sm:$0xff]   ;;  %s619_s12 = sld [smem:[#allocation3]]  ;;  %s765_s11 = smul.u32 24, %s1126_s16 }
  0x52   : > { %s766_s13 = smul.u32 384, %s1028_s3  ;;  %s634_s3 = scalar_lea.sflag [#allocation6], %s1126_s16 }
  0x53   : > { %389 = vrot.lane.b32.xlu0 %v386_v3, %s969_s24  ;;  %348 = vrot.lane.b32.xlu1 %v386_v3, %s971_s14  ;;  %s227_s15 = scalar_lea.vmem [#allocation9], %s765_s11  ;;  %p1250_p5 = scmp.ne.s32.totalorder %s1244_s10, 0 }
  0x54   : > { %s648_s25 = sshll.u32 %s227_s15, 4  ;;  %s1185_s24 = scalar_lea.hbm %s1233_s4, %s766_s13  ;;  %s1187_s25 = int_to_ptr.vmem [resolvable:$true] %s648_s25 }
  0x57   : > { %371 = vrot.lane.b32.xlu0 %v836_v6, %s970_s22  ;;  %346 = vrot.lane.b32.xlu1 %v382_v2, %s971_s14  ;;  %v575_v6 = vlaneseq  ;;  %s978_s14 = smov [#allocation9]  }
  0x5b   : > { %367 = vrot.lane.b32.xlu0 %v365_v7, %s970_s22  ;;  %307 = vrot.lane.b32.xlu1 %v386_v3, %s972_s21  ;;  %s896_s22 = scalar_lea.vmem %s1187_s25, 384 }
  0x5c   : > { %p897_p9 = scmp.ne.s32.totalorder %s1187_s25, %s896_s22 }
  0x5e   : > { %p898_p12 = pnand %p897_p9, %p1250_p5 }
  0x5f   : > { %309 = vrot.lane.b32.xlu0 %v301_v8, %s972_s21  ;;  %328 = vrot.lane.b32.xlu1 %v382_v2, %s973_s26 }
  0x60   : > { %p899_p10 = pneg %p898_p12 }
  0x63   : > { %330 = vrot.lane.b32.xlu0 %v837_v9, %s973_s26  ;;  %305 = vrot.lane.b32.xlu1 %v382_v2, %s972_s21  ;;  %s900_s21 = sshll.u32 %s978_s14, 4  ;;  %s901_s21 = int_to_ptr.vmem [resolvable:$false] %s900_s21 }
  0x64   : > { %p903_p1 = scmp.lt.s32.totalorder %s1187_s25, %s901_s21 }
  0x67   : > { %326 = vrot.lane.b32.xlu0 %v365_v7, %s973_s26  ;;  %266 = vrot.lane.b32.xlu1 %v386_v3, %s974_s28  ;;  %s902_s26 = scalar_lea.vmem %s901_s21, 768 }
  0x68   : > { %p904_p2 = scmp.lt.s32.totalorder %s902_s26, %s896_s22 }
  0x6a   : > { %p905_p0 = por %p904_p2, %p903_p1 }
  0x6b   : > { %268 = vrot.lane.b32.xlu0 %v260_v10, %s974_s28  ;;  %287 = vrot.lane.b32.xlu1 %v382_v2, %s975_s5 }
  0x6c   : > { %p906_p3 = pnand %p905_p0, %p899_p10 }
  0x6f   : > { %289 = vrot.lane.b32.xlu0 %v838_v11, %s975_s5  ;;  %264 = vrot.lane.b32.xlu1 %v382_v2, %s974_s28 }
  0x73   : > { %285 = vrot.lane.b32.xlu0 %v365_v7, %s975_s5  ;;  %245 = vrot.lane.b32.xlu1 %v382_v2, %s976_s6  ;;  %v402_v2 = vld [vmem:[#allocation7] sm:$0xff] }
  0x77   : > { %247 = vrot.lane.b32.xlu0 %v839_v12, %s976_s6  ;;  %243 = vrot.lane.b32.xlu1 %v365_v7, %s976_s6  ;;  %v576_v7 = vshrl.u32 %v575_v6, 7 }
  0x79   : > { %v585_v8 = vsub.s32 2, %v576_v7  ;;  %v577_v9 = vsub.s32 0, %v576_v7  ;;  %v581_v11 = vsub.s32 1, %v576_v7 }
  0xbd   : > { %v392_v13 = vpop.permute.xlu0 %391  ;;  %v388_v14 = vpop.permute.xlu1 %387 }
  0xbe   : > { %401 = vst.msk [vmem:[#allocation2 + $0x70] sm:$0xf] %vm235_vm0, %v392_v13 }
  0xc1   : > { %v370_v15 = vpop.permute.xlu1 %369  ;;  %v351_v16 = vpop.permute.xlu0 %350 }
  0xc2   : > { %360 = vst.msk [vmem:[#allocation2 + $0x58] sm:$0xf] %vm235_vm0, %v351_v16 }
  0xc5   : > { %v390_v17 = vpop.permute.xlu0 %389  ;;  %v349_v18 = vpop.permute.xlu1 %348  ;;  %v417_v19 = vld [vmem:[#allocation2 + $0x70] sm:$0xf] }
  0xc6   : > { %v394_v20 = vsel %vm393_vm2, %v388_v14, %v390_v17  ;;  %v395_v21 = vsel %vm393_vm2, %v390_v17, %v392_v13  ;;  %v354_v22 = vsel %vm352_vm3, %v349_v18, %v351_v16  ;;  %750 = vmatpush3.msk.msra.mxu1 %vm422_vm4, %v417_v19 }
  0xc7   : > { %399 = vst [vmem:[#allocation2 + $0x60] sm:$0xf] %v394_v20  ;;  %400 = vst [vmem:[#allocation2 + $0x68] sm:$0xf] %v395_v21  ;;  %751 = vmatprep.subr.mxu1 %v968_v0 }
  0xc8   : > { %359 = vst [vmem:[#allocation2 + $0x50] sm:$0xf] %v354_v22 }
  0xc9   : > { %v372_v23 = vpop.permute.xlu0 %371  ;;  %v347_v24 = vpop.permute.xlu1 %346 }
  0xca   : > { %v375_v25 = vsel %vm373_vm6, %v370_v15, %v372_v23  ;;  %381 = vst.msk [vmem:[#allocation2 + $0x58] sm:$0xf0] %vm257_vm5, %v372_v23  ;;  %v353_v26 = vsel %vm352_vm3, %v347_v24, %v349_v18 }
  0xcb   : > { %380 = vst [vmem:[#allocation2 + $0x50] sm:$0xf0] %v375_v25  ;;  %358 = vst [vmem:[#allocation2 + $0x48] sm:$0xf] %v353_v26 }
  0xcd   : > { %v368_v27 = vpop.permute.xlu0 %367  ;;  %v308_v28 = vpop.permute.xlu1 %307 }
  0xce   : > { %v374_v29 = vsel %vm373_vm6, %v368_v27, %v370_v15  ;;  %v416_v30 = vld [vmem:[#allocation2 + $0x68] sm:$0xf]  ;;  %v415_v31 = vld [vmem:[#allocation2 + $0x60] sm:$0xf] }
  0xcf   : > { %379 = vst [vmem:[#allocation2 + $0x48] sm:$0xf0] %v374_v29  ;;  %735 = vmatprep.subr.msk.mxu0 %vm422_vm4, %v416_v30 }
  0xd0   : > { %736 = vmatpush1.msk.msra.mxu0 %vm422_vm4, %v415_v31 }
  0xd1   : > { %v310_v32 = vpop.permute.xlu0 %309  ;;  %v329_v33 = vpop.permute.xlu1 %328  ;;  %v414_v34 = vld [vmem:[#allocation2 + $0x58] sm:$0xff] }
  0xd2   : > { %v313_v35 = vsel %vm311_vm7, %v308_v28, %v310_v32  ;;  %319 = vst.msk [vmem:[#allocation2 + $0x40] sm:$0xf] %vm235_vm0, %v310_v32  ;;  %752 = vmatpush3.msra.mxu1 %v414_v34  ;;  %v413_v36 = vld [vmem:[#allocation2 + $0x50] sm:$0xff] }
  0xd3   : > { %318 = vst [vmem:[#allocation2 + $0x38] sm:$0xf] %v313_v35  ;;  %456 = vmatprep.subr.mxu0 %v413_v36  ;;  %753 = vmatprep.subr.mxu1 %v968_v0 }
  0xd5   : > { %v331_v37 = vpop.permute.xlu0 %330  ;;  %v306_v38 = vpop.permute.xlu1 %305 }
  0xd6   : > { %v334_v39 = vsel %vm332_vm8, %v329_v33, %v331_v37  ;;  %340 = vst.msk [vmem:[#allocation2 + $0x40] sm:$0xf0] %vm257_vm5, %v331_v37  ;;  %v312_v40 = vsel %vm311_vm7, %v306_v38, %v308_v28  ;;  %v412_v41 = vld [vmem:[#allocation2 + $0x48] sm:$0xff] }
  0xd7   : > { %339 = vst [vmem:[#allocation2 + $0x38] sm:$0xf0] %v334_v39  ;;  %317 = vst [vmem:[#allocation2 + $0x30] sm:$0xf] %v312_v40  ;;  %457 = vmatpush1.msra.mxu0 %v412_v41  ;;  %v623_v41 = vstv %s619_s12 }
  0xd9   : > { %v327_v42 = vpop.permute.xlu0 %326  ;;  %v267_v43 = vpop.permute.xlu1 %266 }
  0xda   : > { %v333_v44 = vsel %vm332_vm8, %v327_v42, %v329_v33 }
  0xdb   : > { %338 = vst [vmem:[#allocation2 + $0x30] sm:$0xf0] %v333_v44 }
  0xdd   : > { %v269_v45 = vpop.permute.xlu0 %268  ;;  %v288_v46 = vpop.permute.xlu1 %287  ;;  %v411_v47 = vld [vmem:[#allocation2 + $0x40] sm:$0xff] }
  0xde   : > { %v272_v48 = vsel %vm270_vm9, %v267_v43, %v269_v45  ;;  %278 = vst.msk [vmem:[#allocation2 + $0x28] sm:$0xf] %vm235_vm0, %v269_v45  ;;  %754 = vmatpush3.msra.mxu1 %v411_v47  ;;  %v410_v49 = vld [vmem:[#allocation2 + $0x38] sm:$0xff] }
  0xdf   : > { %277 = vst [vmem:[#allocation2 + $0x20] sm:$0xf] %v272_v48  ;;  %458 = vmatprep.subr.mxu0 %v410_v49  ;;  %755 = vmatprep.subr.mxu1 %v968_v0 }
  0xe1   : > { %v290_v50 = vpop.permute.xlu0 %289  ;;  %v265_v51 = vpop.permute.xlu1 %264 }
  0xe2   : > { %v293_v52 = vsel %vm291_vm10, %v288_v46, %v290_v50  ;;  %299 = vst.msk [vmem:[#allocation2 + $0x28] sm:$0xf0] %vm257_vm5, %v290_v50  ;;  %v271_v53 = vsel %vm270_vm9, %v265_v51, %v267_v43  ;;  %v409_v54 = vld [vmem:[#allocation2 + $0x30] sm:$0xff] }
  0xe3   : > { %298 = vst [vmem:[#allocation2 + $0x20] sm:$0xf0] %v293_v52  ;;  %276 = vst [vmem:[#allocation2 + $0x18] sm:$0xf] %v271_v53  ;;  %459 = vmatpush1.msra.mxu0 %v409_v54 }
  0xe5   : > { %v286_v55 = vpop.permute.xlu0 %285  ;;  %v246_v56 = vpop.permute.xlu1 %245 }
  0xe6   : > { %v292_v57 = vsel %vm291_vm10, %v286_v55, %v288_v46 }
  0xe7   : > { %297 = vst [vmem:[#allocation2 + $0x18] sm:$0xf0] %v292_v57 }
  0xe9   : > { %v248_v58 = vpop.permute.xlu0 %247  ;;  %v244_v59 = vpop.permute.xlu1 %243  ;;  %v408_v60 = vld [vmem:[#allocation2 + $0x28] sm:$0xff] }
  0xea   : > { %v251_v61 = vsel %vm249_vm11, %v246_v56, %v248_v58  ;;  %258 = vst.msk [vmem:[#allocation2 + $0x10] sm:$0xf0] %vm257_vm5, %v248_v58  ;;  %v250_v62 = vsel %vm249_vm11, %v244_v59, %v246_v56  ;;  %756 = vmatpush3.msra.mxu1 %v408_v60  ;;  %v407_v63 = vld [vmem:[#allocation2 + $0x20] sm:$0xff] }
  0xeb   : > { %256 = vst [vmem:[#allocation2 + $0x8] sm:$0xf0] %v251_v61  ;;  %255 = vst [vmem:[#allocation2] sm:$0xf0] %v250_v62  ;;  %460 = vmatprep.subr.mxu0 %v407_v63  ;;  %757 = vmatprep.subr.mxu1 %v968_v0  ;;  %v573_v0 = vld [vmem:[%s1231_s2] sm:$0x7] }
  0xec   : > { %v586_v10 = vrot.slane %v573_v0, %v585_v8  ;;  %v578_v12 = vrot.slane %v573_v0, %v577_v9  ;;  %v582_v15 = vrot.slane %v573_v0, %v581_v11 }
  0xee   : > { %v406_v1 = vld [vmem:[#allocation2 + $0x18] sm:$0xff] }
  0xef   : > { %461 = vmatpush1.msra.mxu0 %v406_v1 }
  0xf1   : > { %v405_v3 = vld [vmem:[#allocation2 + $0x10] sm:$0xff] }
  0xf2   : > { %758 = vmatpush3.msra.mxu1 %v405_v3  ;;  %v404_v4 = vld [vmem:[#allocation2 + $0x8] sm:$0xff]  ;;  %v403_v5 = vld [vmem:[#allocation2] sm:$0xff] }
  0xf3   : > { %462 = vmatprep.subr.mxu0 %v404_v4  ;;  %760 = vmatmul.mubr.msk.f32.vlgmr.msra.gmra.mxu1 %vm418_vm12, %v402_v2 }
  0xf4   : > { %463 = vmatpush1.msra.mxu0 %v403_v5 }
  0xf5   : > { %737 = vmatmul.mubr.msk.f32.vlgmr.msra.gmra.mxu0 %vm418_vm12, %v402_v2 }
 0x1b3   : > { %v569_v13 = vpop.f32.mrf.mxu1 }
 0x1b4   : > { %v592_v14 = vmul.f32 %v586_v10, %v569_v13 }
 0x1b5   : > { %v498_v16 = vpop.f32.mrf.mxu0  ;;  %v761_v17 = vpop.f32.mrf.mxu1 }
 0x1b6   : > { %v590_v18 = vmul.f32 %v578_v12, %v498_v16  ;;  %v602_v20 = vmul.f32 %v592_v14, %v592_v14  ;;  %v595_v22 = vsel %vm594_vm13, %v592_v14, 0.0 }
 0x1b7   : > { %v500_v19 = vpop.f32.mrf.mxu0 }
 0x1b8   : > { %v591_v21 = vmul.f32 %v582_v15, %v500_v19  ;;  %v600_v23 = vmul.f32 %v590_v18, %v590_v18  ;;  %v604_v26 = vsel %vm594_vm13, %v602_v20, 0.0 }
 0x1ba   : > { %v601_v24 = vmul.f32 %v591_v21, %v591_v21  ;;  %v593_v25 = vadd.f32 %v591_v21, %v590_v18 }
 0x1bc   : > { %v596_v27 = vadd.f32 %v595_v22, %v593_v25  ;;  %v603_v28 = vadd.f32 %v601_v24, %v600_v23 }
 0x1be   : > { %597 = vadd.xlane.f32.xlu0 %v596_v27  ;;  %v605_v29 = vadd.f32 %v604_v26, %v603_v28 }
 0x1c0   : > { %606 = vadd.xlane.f32.xlu1 %v605_v29 }
 0x247   : > { %v598_v30 = vpop.xlane.xlu0 %597 }
 0x248   : > { %v599_v31 = vmul.f32 0.00390625, %v598_v30 }
 0x249   : > { %v607_v32 = vpop.xlane.xlu1 %606 }
 0x24a   : > { %v608_v33 = vmul.f32 0.00390625, %v607_v32  ;;  %v609_v34 = vmul.f32 %v599_v31, %v599_v31  ;;  %v611_v37 = vsub.f32 %v590_v18, %v599_v31  ;;  %v612_v38 = vsub.f32 %v591_v21, %v599_v31 }
 0x24b   : > { %v613_v39 = vsub.f32 %v592_v14, %v599_v31 }
 0x24c   : > { %v610_v35 = vsub.f32 %v608_v33, %v609_v34 }
 0x24e   : > { %v614_v36 = vadd.f32 1e-05, %v610_v35 }
 0x250   : > { %840 = vrsqrt.f32 %v614_v36 }
 0x25d   : > { %v841_v40 = vpop.eup %840 }
 0x25e   : > { %v616_v42 = vmul.f32 %v841_v40, %v611_v37  ;;  %v617_v43 = vmul.f32 %v841_v40, %v612_v38  ;;  %v618_v44 = vmul.f32 %v841_v40, %v613_v39 }
 0x260   : > { %vm620_vm14 = vcmp.ge.f32.partialorder %v616_v42, 0.0  ;;  %vm621_vm15 = vcmp.ge.f32.partialorder %v617_v43, 0.0  ;;  %vm622_vm0 = vcmp.ge.f32.partialorder %v618_v44, 0.0  ;;  %v624_v45 = vmul.f32 %v623_v41, %v616_v42 }
 0x261   : > { %v625_v46 = vmul.f32 %v623_v41, %v617_v43  ;;  %v626_v47 = vmul.f32 %v623_v41, %v618_v44 }
 0x262   : > { %v627_v48 = vsel %vm620_vm14, %v616_v42, %v624_v45 }
 0x263   : > { %v628_v49 = vsel %vm621_vm15, %v617_v43, %v625_v46  ;;  %v629_v50 = vsel %vm622_vm0, %v618_v44, %v626_v47  ;;  %630 = vst [vmem:[%s227_s15] sm:$0xff] %v627_v48 }
 0x264   : > { %631 = vst [vmem:[%s227_s15 + $0x8] sm:$0xff] %v628_v49  ;;  %632 = vst.msk [vmem:[%s227_s15 + $0x10] sm:$0xff] %vm594_vm13, %v629_v50 }
 0x265   : > { %909 = shalt.err (!%p906_p3)
}
 0x266   : > { %s910_s28 = scalar_lea.hbm %s1185_s24, 384  ;;  %s914_s6 = scalar_lea.hbm %s1233_s4, 768 }
 0x267   : > { %p911_p11 = scmp.ne.s32.totalorder %s1185_s24, %s910_s28  ;;  %p915_p6 = scmp.lt.s32.totalorder %s1185_s24, %s1233_s4 }
 0x268   : > { %p916_p4 = scmp.lt.s32.totalorder %s914_s6, %s910_s28 }
 0x269   : > { %p912_p13 = pnand %p911_p11, %p1250_p5 }
 0x26a   : > { %p917_p8 = por %p916_p4, %p915_p6 }
 0x26b   : > { %p913_p7 = pneg %p912_p13 }
 0x26d   : > { %p918_p9 = pnand %p917_p8, %p913_p7 }
 0x26f   : > { %921 = shalt.err (!%p918_p9)
}
 0x270   : > { %773 = dma.vmem_to_hbm [thread:$0]  (%p1250_p5), %s1187_s25, 384, %s1185_s24, %s634_s3  }
 0x271 PF: > { %s660_s12 = sand.u32 1, %s952_s17   ;;  %p1251_p12 = scmp.ne.s32.totalorder %s1239_s23, 0 }
 0x272   : > { %p1252_p10 = scmp.ge.s32.totalorder %s964_s20, 2  ;;  %s661_s11 = scalar_lea.sflag [#allocation6], %s660_s12 }
 0x274   : > { %p784_p1 = pnand %p1252_p10, %p1251_p12 }
 0x276   : > { %p785_p2 = pneg %p784_p1 }
 0x278   : > { %947 = dma.done.wait (%p785_p2), %s661_s11, 384  }
 0x279   : > { %949 = vsyncadd (%p785_p2), %s661_s11, 4294966912  ;;  %p19_p0 = scmp.ge.s32.totalorder %s1055_s27, 4   ;;  %s1253_s17 = smov %s956_s18 }
 0x27a   : > { %s1254_s18 = smov %s960_s19  ;;  %s1255_s19 = smov %s1082_s9 }
 0x27b   : > { %s1256_s20 = smov %s1055_s27  ;;  %21 = sbr.rel (!%p19_p0) target bundleno = 8 (0x8), region = 85 }
 0x280   :  { %666 = vsyncpa [#allocation5], 1 }
 0x281   :  { %668 = vsyncpa [#allocation5 + $0x1], 1 }
 0x282   :  { %669 = vsyncpa [#allocation8], 1 }
 0x283   :  { %670 = vsyncpa [#allocation6], 1 }
 0x284   :  { %672 = vsyncpa [#allocation6 + $0x1], 1 }

</bundles_post_ra>
